<compile_context>
chip_gen: v5e
topology: v5e:2x2
jax: 0.10.0
libtpu: 0.0.40
codegen_flags: <defaults>
</compile_context>

<pallas_src>
import jax
import jax.numpy as jnp
from jax.experimental import pallas as pl

_LANES = 128


def _round_up(n, m):
    return ((n + m - 1) // m) * m


def pack_params(params):
    """Pack weights/biases/LoRA factors into one (rows, 128) f32 slab.

    Layout (all pre-transposed, kernel never transposes):
      l1  : [W1^T | B1^T(pad r->r_pad)]   (D_in, H1 + r_pad)
      b1  : (1, H1)
      a1t : A1^T zero-padded to r_pad rows (r_pad, H1)
      l2  : [W2^T | B2^T(pad r->r_pad)]   (H1, H2 + r_pad)
      b2  : (1, H2)
      a2t : A2^T zero-padded              (r_pad, H2)
      w3t : W3^T                          (H2, O)   -- read at full 128 lanes
      b3  : (1, O)                                  -- read at full 128 lanes
    Row offsets are multiples of 8 (sublane-aligned static slices); columns are
    zero-padded to 128 lanes. All zero padding contributes exactly 0 to every dot.

    Returns (slab, offsets, dims):
      offsets[name] = (row_offset, n_rows, n_cols)
      dims = (d_in, h1, h2, out_dim, r_pad)
    """
    A1, B1, A2, B2, W1, b1, W2, b2, W3, b3 = [
        jnp.asarray(p, jnp.float32) for p in params
    ]
    r = A1.shape[1]
    r_pad = _round_up(r, 8)
    h1, d_in = W1.shape
    h2 = W2.shape[0]
    out_dim = W3.shape[0]

    assert h1 + r_pad <= _LANES, f"h1 + r_pad = {h1 + r_pad} > {_LANES} lanes"
    assert h2 + r_pad <= _LANES, f"h2 + r_pad = {h2 + r_pad} > {_LANES} lanes"
    assert out_dim <= _LANES

    def pad_cols(m, n):  # (rows, c) -> (rows, n), zero-padded
        return jnp.pad(m, ((0, 0), (0, n - m.shape[1])))

    segments = {
        "l1":  jnp.concatenate([W1.T, pad_cols(B1.T, r_pad)], axis=1),  # (d_in, h1+r_pad)
        "b1":  b1[None, :],                                             # (1, h1)
        "a1t": jnp.pad(A1.T, ((0, r_pad - r), (0, 0))),                 # (r_pad, h1)
        "l2":  jnp.concatenate([W2.T, pad_cols(B2.T, r_pad)], axis=1),  # (h1, h2+r_pad)
        "b2":  b2[None, :],                                             # (1, h2)
        "a2t": jnp.pad(A2.T, ((0, r_pad - r), (0, 0))),                 # (r_pad, h2)
        "w3t": W3.T,                                                    # (h2, out_dim)
        "b3":  b3[None, :],                                             # (1, out_dim)
    }

    offsets = {}
    chunks = []
    row_off = 0
    for name, mat in segments.items():
        n_rows, n_cols = int(mat.shape[0]), int(mat.shape[1])
        rows_padded = _round_up(n_rows, 8)
        chunk = jnp.zeros((rows_padded, _LANES), jnp.float32)
        chunk = chunk.at[:n_rows, :n_cols].set(mat)
        chunks.append(chunk)
        offsets[name] = (row_off, n_rows, n_cols)
        row_off += rows_padded
    slab = jnp.concatenate(chunks, axis=0)
    dims = (d_in, h1, h2, out_dim, r_pad)
    return slab, offsets, dims


def _make_kernel(offsets, dims):
    """Build the kernel closed over static slab offsets / dims (Python ints)."""
    d_in, h1, h2, out_dim, r_pad = dims

    def seg(w_ref, name, ncols=None):
        off, n_rows, n_cols = offsets[name]
        if ncols is None:
            ncols = n_cols
        return w_ref[off:off + n_rows, 0:ncols]      # static slices: free

    def kernel(x_ref, p0_ref, w_ref, out_ref):
        x = x_ref[...]                               # (M, d_in)  M = n_prefs * B (padded)
        p0 = p0_ref[...]                             # (M, r_pad) per-row pref[0]

        # Layer 1: one fused MXU pass over [W1^T | B1^T], then tiny K=r_pad LoRA-up.
        z1 = jnp.dot(x, seg(w_ref, "l1"),
                     preferred_element_type=jnp.float32)          # (M, h1 + r_pad)
        lora1 = p0 * z1[:, h1:h1 + r_pad]                         # (M, r_pad)
        h = (z1[:, :h1]
             + jnp.dot(lora1, seg(w_ref, "a1t"),
                       preferred_element_type=jnp.float32)
             + seg(w_ref, "b1"))
        h = jnp.maximum(h, 0.0)                                   # (M, h1)

        # Layer 2: same fused pattern over [W2^T | B2^T].
        z2 = jnp.dot(h, seg(w_ref, "l2"),
                     preferred_element_type=jnp.float32)          # (M, h2 + r_pad)
        lora2 = p0 * z2[:, h2:h2 + r_pad]                         # (M, r_pad)
        g = (z2[:, :h2]
             + jnp.dot(lora2, seg(w_ref, "a2t"),
                       preferred_element_type=jnp.float32)
             + seg(w_ref, "b2"))
        g = jnp.maximum(g, 0.0)                                   # (M, h2)

        # Layer 3: head read at full 128 lanes (cols >= out_dim are exactly 0),
        # so the store is a single unmasked lane-dense (M, 128) write.
        out = (jnp.dot(g, seg(w_ref, "w3t", ncols=_LANES),
                       preferred_element_type=jnp.float32)
               + seg(w_ref, "b3", ncols=_LANES))                  # (M, 128)
        out_ref[...] = out.astype(out_ref.dtype)

    return kernel


def mtl_psl_lora_forward_prefs_batch(x, prefs_batch, packed):
    """Evaluate the LoRA-MLP for a batch of preference vectors in ONE grid step.

    x: (B, D_in); prefs_batch: (n_prefs, n_obj). Returns (n_prefs, B, O) logits.
    Prefs are stacked into the matmul M dimension; p0 is applied as a per-row
    multiply on the LoRA columns, so a single set of matmuls serves every pref.
    """
    slab, offsets, dims = packed
    d_in, h1, h2, out_dim, r_pad = dims
    n_prefs = int(prefs_batch.shape[0])
    batch = int(x.shape[0])
    m = n_prefs * batch
    m_pad = _round_up(max(m, 8), 8)
    rows = slab.shape[0]

    x = x.astype(jnp.float32)
    x_stacked = jnp.tile(x, (n_prefs, 1))                               # (m, d_in)
    p0_rows = jnp.repeat(prefs_batch[:, 0].astype(jnp.float32), batch)  # (m,)
    if m_pad != m:
        x_stacked = jnp.pad(x_stacked, ((0, m_pad - m), (0, 0)))
        p0_rows = jnp.pad(p0_rows, (0, m_pad - m))
    p0_blk = jnp.tile(p0_rows[:, None], (1, r_pad))                     # (m_pad, r_pad)

    kernel = _make_kernel(offsets, dims)
    out = pl.pallas_call(
        kernel,
        out_shape=jax.ShapeDtypeStruct((m_pad, _LANES), jnp.float32),
        grid=(1,),                                    # single step: no per-pref overhead
        in_specs=[
            pl.BlockSpec((m_pad, d_in), lambda i: (0, 0)),
            pl.BlockSpec((m_pad, r_pad), lambda i: (0, 0)),
            pl.BlockSpec((rows, _LANES), lambda i: (0, 0)),
        ],
        out_specs=pl.BlockSpec((m_pad, _LANES), lambda i: (0, 0)),
    )(x_stacked, p0_blk, slab)

    return out[:m, :out_dim].reshape(n_prefs, batch, out_dim)


def mtl_psl_lora_forward(x, prefs, packed):
    """Module-faithful forward: single preference vector -> {'logits': ...}."""
    y = mtl_psl_lora_forward_prefs_batch(x, prefs[None, :], packed)     # (1, B, O)
    return {"logits": jnp.squeeze(y)}


def _reference_forward(x, prefs, params):
    A1, B1, A2, B2, W1, b1, W2, b2, W3, b3 = params
    w1 = prefs[0] * (A1 @ B1) + W1
    w2 = prefs[0] * (A2 @ B2) + W2
    h = jax.nn.relu(x @ w1.T + b1)
    h = jax.nn.relu(h @ w2.T + b2)
    return jnp.squeeze(h @ W3.T + b3)


if __name__ == "__main__":
    key = jax.random.PRNGKey(0)

    # Small, forward-consistent shapes (tabular MLP): batch=8, in=32,
    # hidden1=64, hidden2=32, out=2, LoRA rank=5 (matching free_rank=5).
    batch, d_in, h1, h2, d_out, rank = 8, 32, 64, 32, 2, 5
    scale = 0.001

    keys = jax.random.split(key, 13)
    A1 = jax.random.uniform(keys[0], (h1, rank), jnp.float32, -1.0, 1.0) * scale
    B1 = jax.random.uniform(keys[1], (rank, d_in), jnp.float32, -1.0, 1.0) * scale
    A2 = jax.random.uniform(keys[2], (h2, rank), jnp.float32, -1.0, 1.0) * scale
    B2 = jax.random.uniform(keys[3], (rank, h1), jnp.float32, -1.0, 1.0) * scale
    W1 = jax.random.uniform(keys[4], (h1, d_in), jnp.float32, -0.1, 0.1)
    b1 = jax.random.uniform(keys[5], (h1,), jnp.float32, -0.1, 0.1)
    W2 = jax.random.uniform(keys[6], (h2, h1), jnp.float32, -0.1, 0.1)
    b2 = jax.random.uniform(keys[7], (h2,), jnp.float32, -0.1, 0.1)
    W3 = jax.random.uniform(keys[8], (d_out, h2), jnp.float32, -0.1, 0.1)
    b3 = jax.random.uniform(keys[9], (d_out,), jnp.float32, -0.1, 0.1)

    x = jax.random.normal(keys[10], (batch, d_in), jnp.float32)
    prefs_raw = jax.random.uniform(keys[11], (2,), jnp.float32, 0.0, 1.0)
    prefs = prefs_raw / jnp.sum(prefs_raw)   # n_obj = 2 preference vector

    params = (A1, B1, A2, B2, W1, b1, W2, b2, W3, b3)
    packed = pack_params(params)             # one-time host-side layout plumbing

    # 1) Single-preference forward (matches the PyTorch module's forward()).
    out = mtl_psl_lora_forward(x, prefs, packed)
    logits = jax.block_until_ready(out["logits"])
    ref = _reference_forward(x, prefs, params)
    assert logits.shape == ref.shape, (logits.shape, ref.shape)
    assert jnp.allclose(logits, ref, atol=1e-5, rtol=1e-5), "single-pref mismatch"

    # 2) Batched preference sweep (PSL evaluate() use-case): ONE pallas_call,
    #    ONE grid step, prefs stacked into the matmul M dimension.
    n_prefs = 4
    pb_raw = jax.random.uniform(keys[12], (n_prefs, 2), jnp.float32, 0.0, 1.0)
    prefs_batch = pb_raw / jnp.sum(pb_raw, axis=1, keepdims=True)
    y_batch = jax.block_until_ready(
        mtl_psl_lora_forward_prefs_batch(x, prefs_batch, packed))
    ref_batch = jnp.stack([_reference_forward(x, p, params) for p in prefs_batch])
    assert y_batch.shape == (n_prefs, batch, d_out), y_batch.shape
    assert jnp.allclose(y_batch, ref_batch, atol=1e-5, rtol=1e-5), "batched mismatch"

    print("KERNEL_OK")
</pallas_src>

<mosaic_0001>
module attributes {stable_mosaic.version = 11 : i64} {
  func.func @kernel(%arg0: i32, %arg1: memref<8x32xf32, #tpu.memory_space<vmem>>, %arg2: memref<8x8xf32, #tpu.memory_space<vmem>>, %arg3: memref<168x128xf32, #tpu.memory_space<vmem>>, %arg4: memref<8x128xf32, #tpu.memory_space<vmem>>) attributes {dimension_semantics = [#tpu.dimension_semantics<arbitrary>], iteration_bounds = array<i64: 1>, scalar_prefetch = 0 : i64, scratch_operands = 0 : i64, tpu.core_type = #tpu.core_type<tc>, window_params = [{pipeline_mode = #tpu.pipeline_mode<synchronous>, transform_indices = @transform_0, window_bounds = array<i64: 8, 32>}, {pipeline_mode = #tpu.pipeline_mode<synchronous>, transform_indices = @transform_1, window_bounds = array<i64: 8, 8>}, {pipeline_mode = #tpu.pipeline_mode<synchronous>, transform_indices = @transform_2, window_bounds = array<i64: 168, 128>}, {pipeline_mode = #tpu.pipeline_mode<synchronous>, transform_indices = @transform_3, window_bounds = array<i64: 8, 128>}]} {
    %c0 = arith.constant 0 : index
    %c0_0 = arith.constant 0 : index
    %0 = vector.load %arg1[%c0, %c0_0] : memref<8x32xf32, #tpu.memory_space<vmem>>, vector<8x32xf32>
    %c0_1 = arith.constant 0 : index
    %c0_2 = arith.constant 0 : index
    %1 = vector.load %arg2[%c0_1, %c0_2] : memref<8x8xf32, #tpu.memory_space<vmem>>, vector<8x8xf32>
    %c0_3 = arith.constant 0 : index
    %c0_4 = arith.constant 0 : index
    %2 = vector.load %arg3[%c0_3, %c0_4] : memref<168x128xf32, #tpu.memory_space<vmem>>, vector<32x72xf32>
    %cst = arith.constant dense<0.000000e+00> : vector<8x72xf32>
    %3 = tpu.matmul %0, %2, %cst {dimension_numbers = #tpu.dot_dimension_numbers<[1], [0], [0], [1], [0, 0, 1, 1], [], []>} : vector<8x32xf32>, vector<32x72xf32>, vector<8x72xf32> -> vector<8x72xf32>
    %4 = vector.extract_strided_slice %3 {offsets = [0, 64], sizes = [8, 8], strides = [1, 1]} : vector<8x72xf32> to vector<8x8xf32>
    %5 = arith.mulf %1, %4 : vector<8x8xf32>
    %6 = vector.extract_strided_slice %3 {offsets = [0, 0], sizes = [8, 64], strides = [1, 1]} : vector<8x72xf32> to vector<8x64xf32>
    %c40 = arith.constant 40 : index
    %c0_5 = arith.constant 0 : index
    %7 = vector.load %arg3[%c40, %c0_5] : memref<168x128xf32, #tpu.memory_space<vmem>>, vector<8x64xf32>
    %cst_6 = arith.constant dense<0.000000e+00> : vector<8x64xf32>
    %8 = tpu.matmul %5, %7, %cst_6 {dimension_numbers = #tpu.dot_dimension_numbers<[1], [0], [0], [1], [0, 0, 1, 1], [], []>} : vector<8x8xf32>, vector<8x64xf32>, vector<8x64xf32> -> vector<8x64xf32>
    %9 = arith.addf %6, %8 : vector<8x64xf32>
    %c32 = arith.constant 32 : index
    %c0_7 = arith.constant 0 : index
    %10 = vector.load %arg3[%c32, %c0_7] : memref<168x128xf32, #tpu.memory_space<vmem>>, vector<1x64xf32>
    %11 = vector.broadcast %10 : vector<1x64xf32> to vector<8x64xf32>
    %12 = arith.addf %9, %11 : vector<8x64xf32>
    %cst_8 = arith.constant 0.000000e+00 : f32
    %13 = vector.broadcast %cst_8 : f32 to vector<8x64xf32>
    %14 = arith.maximumf %12, %13 : vector<8x64xf32>
    %c48 = arith.constant 48 : index
    %c0_9 = arith.constant 0 : index
    %15 = vector.load %arg3[%c48, %c0_9] : memref<168x128xf32, #tpu.memory_space<vmem>>, vector<64x40xf32>
    %cst_10 = arith.constant dense<0.000000e+00> : vector<8x40xf32>
    %16 = tpu.matmul %14, %15, %cst_10 {dimension_numbers = #tpu.dot_dimension_numbers<[1], [0], [0], [1], [0, 0, 1, 1], [], []>} : vector<8x64xf32>, vector<64x40xf32>, vector<8x40xf32> -> vector<8x40xf32>
    %17 = vector.extract_strided_slice %16 {offsets = [0, 32], sizes = [8, 8], strides = [1, 1]} : vector<8x40xf32> to vector<8x8xf32>
    %18 = arith.mulf %1, %17 : vector<8x8xf32>
    %19 = vector.extract_strided_slice %16 {offsets = [0, 0], sizes = [8, 32], strides = [1, 1]} : vector<8x40xf32> to vector<8x32xf32>
    %c120 = arith.constant 120 : index
    %c0_11 = arith.constant 0 : index
    %20 = vector.load %arg3[%c120, %c0_11] : memref<168x128xf32, #tpu.memory_space<vmem>>, vector<8x32xf32>
    %cst_12 = arith.constant dense<0.000000e+00> : vector<8x32xf32>
    %21 = tpu.matmul %18, %20, %cst_12 {dimension_numbers = #tpu.dot_dimension_numbers<[1], [0], [0], [1], [0, 0, 1, 1], [], []>} : vector<8x8xf32>, vector<8x32xf32>, vector<8x32xf32> -> vector<8x32xf32>
    %22 = arith.addf %19, %21 : vector<8x32xf32>
    %c112 = arith.constant 112 : index
    %c0_13 = arith.constant 0 : index
    %23 = vector.load %arg3[%c112, %c0_13] : memref<168x128xf32, #tpu.memory_space<vmem>>, vector<1x32xf32>
    %24 = vector.broadcast %23 : vector<1x32xf32> to vector<8x32xf32>
    %25 = arith.addf %22, %24 : vector<8x32xf32>
    %cst_14 = arith.constant 0.000000e+00 : f32
    %26 = vector.broadcast %cst_14 : f32 to vector<8x32xf32>
    %27 = arith.maximumf %25, %26 : vector<8x32xf32>
    %c128 = arith.constant 128 : index
    %c0_15 = arith.constant 0 : index
    %28 = vector.load %arg3[%c128, %c0_15] : memref<168x128xf32, #tpu.memory_space<vmem>>, vector<32x128xf32>
    %cst_16 = arith.constant dense<0.000000e+00> : vector<8x128xf32>
    %29 = tpu.matmul %27, %28, %cst_16 {dimension_numbers = #tpu.dot_dimension_numbers<[1], [0], [0], [1], [0, 0, 1, 1], [], []>} : vector<8x32xf32>, vector<32x128xf32>, vector<8x128xf32> -> vector<8x128xf32>
    %c160 = arith.constant 160 : index
    %c0_17 = arith.constant 0 : index
    %30 = vector.load %arg3[%c160, %c0_17] : memref<168x128xf32, #tpu.memory_space<vmem>>, vector<1x128xf32>
    %31 = vector.broadcast %30 : vector<1x128xf32> to vector<8x128xf32>
    %32 = arith.addf %29, %31 : vector<8x128xf32>
    %c0_18 = arith.constant 0 : index
    %c0_19 = arith.constant 0 : index
    %33 = vector.load %arg4[%c0_18, %c0_19] : memref<8x128xf32, #tpu.memory_space<vmem>>, vector<8x128xf32>
    tpu.vector_store %arg4[%c0_18, %c0_19], %32 {strides = array<i32>} : memref<8x128xf32, #tpu.memory_space<vmem>>, vector<8x128xf32>,
    return
  }
  func.func @transform_0(%arg0: i32) -> (i32, i32) {
    %c0_i32 = arith.constant 0 : i32
    %c0_i32_0 = arith.constant 0 : i32
    %c0_i32_1 = arith.constant 0 : i32
    return %c0_i32, %c0_i32_0 : i32, i32
  }
  func.func @transform_1(%arg0: i32) -> (i32, i32) {
    %c0_i32 = arith.constant 0 : i32
    %c0_i32_0 = arith.constant 0 : i32
    %c0_i32_1 = arith.constant 0 : i32
    return %c0_i32, %c0_i32_0 : i32, i32
  }
  func.func @transform_2(%arg0: i32) -> (i32, i32) {
    %c0_i32 = arith.constant 0 : i32
    %c0_i32_0 = arith.constant 0 : i32
    %c0_i32_1 = arith.constant 0 : i32
    return %c0_i32, %c0_i32_0 : i32, i32
  }
  func.func @transform_3(%arg0: i32) -> (i32, i32) {
    %c0_i32 = arith.constant 0 : i32
    %c0_i32_0 = arith.constant 0 : i32
    %c0_i32_1 = arith.constant 0 : i32
    return %c0_i32, %c0_i32_0 : i32, i32
  }
}

</mosaic_0001>

<bundles_post_ra>
// kernel: tpu_custom_call.1
= control target key start
LH: loop header
LB: loop body
LE: loop exit
PB: predicated region body
PF: predicated region fallthrough
CT: control target
= control target key end

     0   :  { %8 = vsyncpa [#allocation3], 0  ;;  %s399_s0 = inlined_call_operand.hbm [shape: f32[8,32], index: 0, kind: input, shape index: {}]   ;;  %s400_s1 = inlined_call_operand.hbm [shape: f32[8,8], index: 1, kind: input, shape index: {}]   ;;  %s401_s2 = inlined_call_operand.hbm [shape: f32[168,128], index: 2, kind: input, shape index: {}]   ;;  %s402_s3 = inlined_call_operand.hbm [shape: f32[8,128], index: 3, kind: output, shape index: {}]  }
   0x1   :  { %9 = vsyncpa [#allocation6], 0  ;;  %s27_s14 = sshll.u32 %s400_s1, 4  ;;  %s28_s14 = int_to_ptr.hbm [resolvable:$true] %s27_s14 }
   0x2   :  { %10 = vsyncpa [#allocation4], 0  ;;  %s355_s15 = smov [#allocation5]   ;;  %s16_s19 = sshll.u32 %s399_s0, 4  ;;  %s17_s19 = int_to_ptr.hbm [resolvable:$true] %s16_s19 }
   0x3   :  { %s29_s16 = sshll.u32 %s355_s15, 4  ;;  %s356_s20 = smov [#allocation2]   ;;  %s30_s16 = int_to_ptr.vmem [resolvable:$true] %s29_s16 }
   0x4   :  { %32 = dma.hbm_to_vmem [thread:$0]  %s28_s14, 128, %s30_s16, [#allocation6]  }
   0x5   :  { %s18_s21 = sshll.u32 %s356_s20, 4  ;;  %s37_s24 = sshll.u32 %s401_s2, 4  ;;  %s19_s21 = int_to_ptr.vmem [resolvable:$true] %s18_s21  ;;  %s38_s24 = int_to_ptr.hbm [resolvable:$true] %s37_s24 }
   0x6   :  { %21 = dma.hbm_to_vmem [thread:$0]  %s17_s19, 128, %s19_s21, [#allocation3]  }
   0x7   :  { %s357_s1 = smov [#allocation7]   ;;  %s358_s26 = smov 128  }
   0x8   :  { %s39_s25 = sshll.u32 %s357_s1, 4  ;;  %s359_s27 = smov 8   ;;  %s40_s25 = int_to_ptr.vmem [resolvable:$true] %s39_s25 }
   0x9   :  { %45 = dma.hbm_to_vmem [thread:$0]  %s38_s24, 2688, %s40_s25, [#allocation6], %s358_s26, %s358_s26, %s359_s27  }
   0xa   :  { %349 = dma.done.wait [#allocation3], 128  }
   0xb   :  { %350 = vsyncadd [#allocation3], 4294967168 }
   0xc   :  { %351 = dma.done.wait [#allocation6], 2816  }
   0xd   :  { %352 = vsyncadd [#allocation6], 4294964480  ;;  %v63_v0 = vld [vmem:[#allocation7 + $0x18] sm:$0xff]  ;;  %v62_v1 = vld [vmem:[#allocation7 + $0x10] sm:$0xff]  ;;  %vm64_vm0 = vcmask 261120   ;;  %s360_s0 = smov 64  }
   0xe   :  { %80 = vmatpush.msra.mxu0 %v63_v0  ;;  %v61_v2 = vld [vmem:[#allocation7 + $0x8] sm:$0xff]  ;;  %v60_v3 = vld [vmem:[#allocation7] sm:$0xff]  ;;  %v58_v4 = vld [vmem:[#allocation2] sm:$0xff]  ;;  %vm94_vm1 = vcmask 64512   ;;  %vm131_vm2 = vcmask 523264   ;;  %s361_s2 = smov 96  }
   0xf   :  { %v93_v6 = vld [vmem:[#allocation7 + $0x28] sm:$0xff]  ;;  %v129_v8 = vld [vmem:[#allocation7 + $0x60] sm:$0xff]  ;;  %v128_v9 = vld [vmem:[#allocation7 + $0x58] sm:$0xff]  ;;  %s362_s28 = smov [#allocation8]   ;;  %s226_s5 = sshll.u32 %s402_s3, 4  ;;  %s227_s5 = int_to_ptr.hbm [resolvable:$true] %s226_s5 }
  0x10   :  { %81 = vmatpush.msra.mxu0 %v62_v1  ;;  %113 = vmatpush.msra.mxu1 %v93_v6  ;;  %v130_v7 = vld [vmem:[#allocation7 + $0x68] sm:$0xff]  ;;  %v127_v10 = vld [vmem:[#allocation7 + $0x50] sm:$0xff]  ;;  %v59_v11 = vld [vmem:[#allocation5] sm:$0xff]  ;;  %s224_s29 = sshll.u32 %s362_s28, 4  ;;  %s225_s29 = int_to_ptr.vmem [resolvable:$true] %s224_s29 }
  0x11   :  { %143 = vmatpush.msra.mxu2 %v130_v7  ;;  %v126_v14 = vld [vmem:[#allocation7 + $0x48] sm:$0xff]  ;;  %v125_v15 = vld [vmem:[#allocation7 + $0x40] sm:$0xff]  ;;  %v124_v16 = vld [vmem:[#allocation7 + $0x38] sm:$0xff] }
  0x12   :  { %82 = vmatpush.msra.mxu0 %v61_v2  ;;  %v123_v17 = vld [vmem:[#allocation7 + $0x30] sm:$0xff]  ;;  %v250_v18 = vld [vmem:[#allocation7 + $0x20] ss:$0 sm:$0xff]  ;;  %v160_v24 = vld [vmem:[#allocation7 + $0x78] sm:$0xff] }
  0x13   :  { %144 = vmatpush.msra.mxu2 %v129_v8  ;;  %179 = vmatpush.msra.mxu3 %v160_v24  ;;  %v192_v25 = vld [vmem:[#allocation7 + $0x98] sm:$0xff]  ;;  %v191_v28 = vld [vmem:[#allocation7 + $0x90] sm:$0xff]  ;;  %v190_v29 = vld [vmem:[#allocation7 + $0x88] sm:$0xff] }
  0x14   :  { %83 = vmatpush.msra.mxu0 %v60_v3  ;;  %210 = vmatpush.msrb.mxu1 %v192_v25  ;;  %v189_v30 = vld [vmem:[#allocation7 + $0x80] sm:$0xff]  ;;  %v251_v31 = vld [vmem:[#allocation7 + $0x70] ss:$0 sm:$0xff] }
  0x15   :  { %237 = vmatmul.msk.f32.vlgmr.msra.gmra.mxu0 %vm64_vm0, %v58_v4  ;;  %145 = vmatpush.msra.mxu2 %v128_v9  ;;  %v252_v36 = vld [vmem:[#allocation7 + $0xa0] ss:$0 sm:$0xff] }
  0x16   :  { %211 = vmatpush.msrb.mxu1 %v191_v28 }
  0x17   :  { %146 = vmatpush.msra.mxu2 %v127_v10 }
  0x18   :  { %212 = vmatpush.msrb.mxu1 %v190_v29 }
  0x19   :  { %147 = vmatpush.msra.mxu2 %v126_v14 }
  0x1a   :  { %213 = vmatpush.msrb.mxu1 %v189_v30 }
  0x1b   :  { %148 = vmatpush.msra.mxu2 %v125_v15 }
  0x1d   :  { %149 = vmatpush.msra.mxu2 %v124_v16 }
  0x1f   :  { %150 = vmatpush.msra.mxu2 %v123_v17 }
  0x92   :  { %v85_v5 = vpop.f32.mrf.mxu0 }
  0x93   :  { %89 = vrot.lane.b32.xlu0 %v85_v5, %s360_s0 }
 0x105   :  { %v90_v12 = vpop.permute.xlu0 %89 }
 0x106   :  { %v92_v13 = vmul.f32 %v90_v12, %v59_v11 }
 0x108   :  { %238 = vmatmul.msk.f32.vlgmr.msra.gmra.mxu1 %vm94_vm1, %v92_v13 }
 0x185   :  { %v115_v19 = vpop.f32.mrf.mxu1 }
 0x186   :  { %v118_v20 = vadd.f32 %v115_v19, %v85_v5 }
 0x188   :  { %v121_v21 = vadd.f32 %v250_v18, %v118_v20 }
 0x18a   :  { %v122_v22 = vmax.f32 %v121_v21, 0.0 }
 0x18c   :  { %239 = vmatmul.msk.f32.vlgmr.msra.gmra.mxu2 %vm131_vm2, %v122_v22 }
 0x20f   :  { %v152_v23 = vpop.f32.mrf.mxu2 }
 0x210   :  { %156 = vrot.lane.b32.xlu0 %v152_v23, %s361_s2 }
 0x282   :  { %v157_v26 = vpop.permute.xlu0 %156 }
 0x283   :  { %v159_v27 = vmul.f32 %v157_v26, %v59_v11 }
 0x285   :  { %240 = vmatmul.msk.f32.vlgmr.msra.gmra.mxu3 %vm94_vm1, %v159_v27 }
 0x308   :  { %v181_v32 = vpop.f32.mrf.mxu3 }
 0x309   :  { %v184_v33 = vadd.f32 %v181_v32, %v152_v23 }
 0x30b   :  { %v187_v34 = vadd.f32 %v251_v31, %v184_v33 }
 0x30d   :  { %v188_v35 = vmax.f32 %v187_v34, 0.0 }
 0x30f   :  { %241 = vmatmul.msk.f32.vlgmr.msrb.gmra.mxu1 %vm64_vm0, %v188_v35 }
 0x38c   :  { %v215_v37 = vpop.f32.mrf.mxu1 }
 0x38d   :  { %v216_v38 = vadd.f32 %v252_v36, %v215_v37 }
 0x38f   :  { %218 = vst [vmem:[#allocation8] sm:$0xff] %v216_v38 }
 0x390   :  { %229 = dma.vmem_to_hbm [thread:$0]  %s225_s29, 128, %s227_s5, [#allocation4]  }
 0x391   :  { %353 = dma.done.wait [#allocation4], 128  }
 0x392   :  { %354 = vsyncadd [#allocation4], 4294967168 }
 0x393   :  { %234 = vsyncpa [#allocation3], 1 }
 0x394   :  { %235 = vsyncpa [#allocation6], 1 }
 0x395   :  { %236 = vsyncpa [#allocation4], 1 }

</bundles_post_ra>
